<compile_context>
chip_gen: v5e
topology: v5e:2x2
jax: 0.10.0
libtpu: 0.0.40
codegen_flags: <defaults>
</compile_context>

<pallas_src>
import functools

import jax
import jax.numpy as jnp
from jax.experimental import pallas as pl
from jax.experimental.pallas import tpu as pltpu

# ----------------------------- problem sizes ---------------------------------
BATCH = 2
N_CLASSES = 10

# Standard CapsNet margin-loss hyper-parameters (constructor args of MarginLoss).
M_POS = 0.9
M_NEG = 0.1
LAMBDA = 0.5


# ------------------------------- Pallas kernel --------------------------------

def _margin_loss_kernel(lengths_ref, targets_ref, out_ref, *,
                        m_pos, m_neg, lambda_, size_average):
    # lengths_ref: (B, C) VMEM, native dtype -> upcast in-kernel (free VPU cast)
    # targets_ref: (B,)  SMEM int32
    # out_ref:     (1,1) SMEM float32
    lengths = lengths_ref[...].astype(jnp.float32)                 # (B, C)
    B, C = lengths.shape

    class_ids = jax.lax.broadcasted_iota(jnp.int32, (B, C), 1)     # (B, C)
    row_ids = jax.lax.broadcasted_iota(jnp.int32, (B, C), 0)       # (B, C)

    # Broadcast the B SMEM scalars into a (B, C) target map (replaces scatter_).
    tgt_bcast = jnp.zeros((B, C), jnp.int32)
    for b in range(B):                                             # B is tiny & static
        tgt_bcast = jnp.where(row_ids == b, targets_ref[b], tgt_bcast)

    pos2 = jnp.square(jnp.maximum(m_pos - lengths, 0.0))           # relu(m_pos - l)^2
    neg2 = lambda_ * jnp.square(jnp.maximum(lengths - m_neg, 0.0)) # lambda*relu(l-m_neg)^2

    losses = jnp.where(class_ids == tgt_bcast, pos2, neg2)         # (B, C)

    total = jnp.sum(losses)                                        # scalar f32
    if size_average:
        total = total * (1.0 / float(B * C))                       # mean()
    out_ref[0, 0] = total


def margin_loss(lengths, targets, *, m_pos=M_POS, m_neg=M_NEG,
                lambda_=LAMBDA, size_average=True):
    """lengths: (B, C) float, targets: (B,) int -> scalar loss."""
    B, C = lengths.shape
    kernel = functools.partial(
        _margin_loss_kernel,
        m_pos=float(m_pos), m_neg=float(m_neg), lambda_=float(lambda_),
        size_average=bool(size_average))
    out = pl.pallas_call(
        kernel,
        out_shape=jax.ShapeDtypeStruct((1, 1), jnp.float32),
        in_specs=[
            pl.BlockSpec(memory_space=pltpu.MemorySpace.VMEM),   # lengths (B, C)
            pl.BlockSpec(memory_space=pltpu.MemorySpace.SMEM),   # targets (B,)
        ],
        out_specs=pl.BlockSpec(memory_space=pltpu.MemorySpace.SMEM),
    )(lengths, targets.astype(jnp.int32))
    return out[0, 0]


# ----------------------------------- main --------------------------------------

if __name__ == "__main__":
    key = jax.random.PRNGKey(0)
    kl, kt = jax.random.split(key)
    # "lengths" are capsule vector norms, i.e. values in [0, 1).
    lengths = jax.random.uniform(kl, (BATCH, N_CLASSES), jnp.float32, 0.0, 1.0)
    targets = jax.random.randint(kt, (BATCH,), 0, N_CLASSES)

    loss = jax.jit(margin_loss)(lengths, targets)
    jax.block_until_ready(loss)

    # pure-JAX reference (mirrors the PyTorch forward exactly)
    t = jax.nn.one_hot(targets, N_CLASSES, dtype=jnp.float32)
    ref = jnp.mean(
        t * jnp.maximum(M_POS - lengths, 0.0) ** 2
        + LAMBDA * (1.0 - t) * jnp.maximum(lengths - M_NEG, 0.0) ** 2)

    assert loss.shape == (), loss.shape
    assert bool(jnp.isfinite(loss))
    assert abs(float(loss) - float(ref)) < 1e-6, (float(loss), float(ref))
    print("KERNEL_OK")
</pallas_src>

<mosaic_0001>
module attributes {stable_mosaic.version = 11 : i64} {
  func.func @_margin_loss_kernel(%arg0: memref<2x10xf32, #tpu.memory_space<vmem>>, %arg1: memref<2xi32, #tpu.memory_space<smem>>, %arg2: memref<1x1xf32, #tpu.memory_space<smem>>) attributes {dimension_semantics = [], scalar_prefetch = 0 : i64, scratch_operands = 0 : i64, tpu.core_type = #tpu.core_type<tc>} {
    %c0 = arith.constant 0 : index
    %c0_0 = arith.constant 0 : index
    %0 = vector.load %arg0[%c0, %c0_0] : memref<2x10xf32, #tpu.memory_space<vmem>>, vector<2x10xf32>
    %1 = tpu.iota {dimensions = array<i32: 1>} : vector<2x10xi32>
    %2 = tpu.iota {dimensions = array<i32: 0>} : vector<2x10xi32>
    %c0_i32 = arith.constant 0 : i32
    %3 = vector.broadcast %c0_i32 : i32 to vector<2x10xi32>
    %c0_i32_1 = arith.constant 0 : i32
    %4 = vector.broadcast %c0_i32_1 : i32 to vector<2x10xi32>
    %5 = arith.cmpi eq, %2, %4 : vector<2x10xi32>
    %c0_2 = arith.constant 0 : index
    %6 = memref.load %arg1[%c0_2] : memref<2xi32, #tpu.memory_space<smem>>
    %7 = vector.broadcast %6 : i32 to vector<2x10xi32>
    %8 = arith.select %5, %7, %3 : vector<2x10xi1>, vector<2x10xi32>
    %c1_i32 = arith.constant 1 : i32
    %9 = vector.broadcast %c1_i32 : i32 to vector<2x10xi32>
    %10 = arith.cmpi eq, %2, %9 : vector<2x10xi32>
    %c1 = arith.constant 1 : index
    %11 = memref.load %arg1[%c1] : memref<2xi32, #tpu.memory_space<smem>>
    %12 = vector.broadcast %11 : i32 to vector<2x10xi32>
    %13 = arith.select %10, %12, %8 : vector<2x10xi1>, vector<2x10xi32>
    %cst = arith.constant 0.899999976 : f32
    %14 = vector.broadcast %cst : f32 to vector<2x10xf32>
    %15 = arith.subf %14, %0 : vector<2x10xf32>
    %cst_3 = arith.constant 0.000000e+00 : f32
    %16 = vector.broadcast %cst_3 : f32 to vector<2x10xf32>
    %17 = arith.maximumf %15, %16 : vector<2x10xf32>
    %18 = arith.mulf %17, %17 : vector<2x10xf32>
    %cst_4 = arith.constant 1.000000e-01 : f32
    %19 = vector.broadcast %cst_4 : f32 to vector<2x10xf32>
    %20 = arith.subf %0, %19 : vector<2x10xf32>
    %cst_5 = arith.constant 0.000000e+00 : f32
    %21 = vector.broadcast %cst_5 : f32 to vector<2x10xf32>
    %22 = arith.maximumf %20, %21 : vector<2x10xf32>
    %23 = arith.mulf %22, %22 : vector<2x10xf32>
    %cst_6 = arith.constant 5.000000e-01 : f32
    %24 = vector.broadcast %cst_6 : f32 to vector<2x10xf32>
    %25 = arith.mulf %24, %23 : vector<2x10xf32>
    %26 = arith.cmpi eq, %1, %13 : vector<2x10xi32>
    %27 = arith.select %26, %18, %25 : vector<2x10xi1>, vector<2x10xf32>
    %28 = vector.shape_cast %27 : vector<2x10xf32> to vector<1x2x10xf32>
    %cst_7 = arith.constant dense<0.000000e+00> : vector<1xf32>
    %29 = vector.multi_reduction <add>, %28, %cst_7 [1, 2] : vector<1x2x10xf32> to vector<1xf32>
    %30 = vector.shape_cast %29 : vector<1xf32> to vector<1x1x1xf32>
    %31 = vector.extract %30[0, 0, 0] : f32 from vector<1x1x1xf32>
    %cst_8 = arith.constant 5.000000e-02 : f32
    %32 = arith.mulf %31, %cst_8 : f32
    %c0_9 = arith.constant 0 : index
    %c0_10 = arith.constant 0 : index
    %33 = memref.load %arg2[%c0_9, %c0_10] : memref<1x1xf32, #tpu.memory_space<smem>>
    memref.store %32, %arg2[%c0_9, %c0_10] : memref<1x1xf32, #tpu.memory_space<smem>>
    return
  }
}

</mosaic_0001>

<bundles_post_ra>
// kernel: margin_loss.1
= control target key start
LH: loop header
LB: loop body
LE: loop exit
PB: predicated region body
PF: predicated region fallthrough
CT: control target
= control target key end

     0   :  { %7 = vsyncpa [#allocation3], 0  ;;  %s180_s0 = inlined_call_operand.hbm [shape: f32[2,10], index: 0, kind: input, shape index: {}]   ;;  %s181_s1 = inlined_call_operand.hbm [shape: s32[2], index: 1, kind: input, shape index: {}]   ;;  %s182_s2 = inlined_call_operand.hbm [shape: f32[1,1], index: 2, kind: output, shape index: {}]  }
   0x1   :  { %8 = vsyncpa [#allocation4], 0 }
   0x2   :  { %9 = vsyncpa [#allocation5], 0  ;;  %s15_s11 = sshll.u32 %s180_s0, 4  ;;  %s153_s12 = smov [#allocation2]   ;;  %s16_s11 = int_to_ptr.hbm [resolvable:$true] %s15_s11 }
   0x3   :  { %s17_s13 = sshll.u32 %s153_s12, 4  ;;  %s26_s16 = sshll.u32 %s181_s1, 4  ;;  %s18_s13 = int_to_ptr.vmem [resolvable:$true] %s17_s13  ;;  %s27_s16 = int_to_ptr.hbm [resolvable:$true] %s26_s16 }
   0x4   :  { %20 = dma.hbm_to_vmem [thread:$0]  %s16_s11, 32, %s18_s13, [#allocation3]  }
   0x5   :  { %s154_s17 = smov [#allocation6]  }
   0x6   :  { %29 = dma.hbm_to_smem %s27_s16, 16, %s154_s17, [#allocation4]  }
   0x7   :  { %147 = dma.done.wait [#allocation3], 32  }
   0x8   :  { %148 = vsyncadd [#allocation3], 4294967264 }
   0x9   :  { %149 = dma.done.wait [#allocation4], 16  }
   0xa   :  { %150 = vsyncadd [#allocation4], 4294967280 }
   0xb   :  { %38 = sfence }
   0xc   :  { %v39_v0 = vld [vmem:[#allocation2] sm:$0x3]  ;;  %v40_v1 = vlaneseq  ;;  %s45_s0 = sld [smem:[#allocation6]]  ;;  %vm61_vm2 = vcmask 74752   ;;  %s80_s20 = sshll.u32 %s182_s2, 4  ;;  %s81_s20 = int_to_ptr.hbm [resolvable:$true] %s80_s20 }
   0xd   :  { %s92_s18 = sld [smem:[#allocation6 + $0x1]]  ;;  %v52_v2 = vsub.f32 0.9, %v39_v0  ;;  %v93_v3 = vadd.f32 -0.1, %v39_v0  ;;  %s155_s23 = smov [#allocation7]  }
   0xe   :  { %v43_v4 = vshrl.u32 %v40_v1, 7  ;;  %v41_v7 = vand.u32 127, %v40_v1 }
   0xf   :  { %v53_v5 = vmax.f32 %v52_v2, 0.0  ;;  %v56_v6 = vmax.f32 %v93_v3, 0.0 }
  0x10   :  { %vm44_vm0 = vcmp.eq.s32.totalorder %v43_v4, 0  ;;  %vm48_vm1 = vcmp.eq.s32.totalorder %v43_v4, 1 }
  0x11   :  { %v57_v8 = vmul.f32 %v56_v6, %v56_v6  ;;  %v54_v10 = vmul.f32 %v53_v5, %v53_v5 }
  0x12   :  { %v46_v9 = vstv %s45_s0 }
  0x13   :  { %v47_v11 = vsel %vm44_vm0, %v46_v9, 0  ;;  %v50_v12 = vstv %s92_s18  ;;  %v58_v13 = vmul.f32 0.5, %v57_v8 }
  0x14   :  { %v51_v14 = vsel %vm48_vm1, %v50_v12, %v47_v11 }
  0x15   :  { %vm59_vm3 = vcmp.eq.s32.totalorder %v41_v7, %v51_v14 }
  0x16   :  { %v60_v15 = vsel %vm59_vm3, %v54_v10, %v58_v13 }
  0x17   :  { %v62_v16 = vsel %vm61_vm2, %v60_v15, 0.0 }
  0x18   :  { %63 = vadd.xlane.f32.xlu0 %v62_v16 }
  0x8b   :  { %v64_v17 = vpop.xlane.xlu0 %63 }
  0x8c   :  { %v65_v18 = vrot.slane %v64_v17, 4 }
  0x8e   :  { %v66_v19 = vadd.f32 %v65_v18, %v64_v17 }
  0x90   :  { %v67_v20 = vrot.slane %v66_v19, 2 }
  0x92   :  { %v68_v21 = vadd.f32 %v67_v20, %v66_v19 }
  0x94   :  { %v69_v22 = vrot.slane %v68_v21, 1 }
  0x96   :  { %v70_v23 = vadd.f32 %v69_v22, %v68_v21 }
  0x98   :  { %94 = vpush %v70_v23 }
  0xc9   :  { %s95_s21 = spop %94 }
  0xca   :  { %s72_s22 = smul.f32 0.05, %s95_s21 }
  0xcc   :  { %74 = sst [smem:[#allocation7]] %s72_s22 }
  0xcd   :  { %83 = dma.smem_to_hbm %s155_s23, 16, %s81_s20, [#allocation5]  }
  0xce   :  { %151 = dma.done.wait [#allocation5], 16  }
  0xcf   :  { %152 = vsyncadd [#allocation5], 4294967280 }
  0xd0   :  { %88 = sfence }
  0xd1   :  { %89 = vsyncpa [#allocation3], 1 }
  0xd2   :  { %90 = vsyncpa [#allocation4], 1 }
  0xd3   :  { %91 = vsyncpa [#allocation5], 1 }

</bundles_post_ra>
